<compile_context>
chip_gen: v7x
topology: tpu7x:2x2x1
jax: 0.10.0
libtpu: 0.0.40
codegen_flags: <defaults>
</compile_context>

<pallas_src>
import functools

import jax
import jax.numpy as jnp
from jax.experimental import pallas as pl
from jax.experimental.pallas import tpu as pltpu


def rnn_seq_kernel(
    cx_ref,      # [T*B, C+I]  cat(category, x_t) for all steps, time-major rows
    h0_ref,      # [B, H]      initial hidden state
    wxh_ref,     # [C+I, H]    i2h rows acting on cat(category, x)
    wxo_ref,     # [C+I, O]    folded output-path rows acting on cat(category, x)
    whh_ref,     # [H, H]      i2h rows acting on the previous hidden
    who_ref,     # [H, O]      folded output-path rows acting on the previous hidden
    bh_ref,      # [1, H]      i2h bias
    bo_ref,      # [1, O]      folded output-path bias
    out_ref,     # [T*B, O]    log-softmax output (written once)
    hT_ref,      # [B, H]      final hidden state (written once)
    *,
    T: int,
    B: int,
):
    cx = cx_ref[...]

    # ---- Batched input projections for ALL timesteps (off the serial path).
    zin_h = (
        jnp.dot(cx, wxh_ref[...], preferred_element_type=jnp.float32)
        + bh_ref[...]
    )  # [T*B, H]
    zin_o = (
        jnp.dot(cx, wxo_ref[...], preferred_element_type=jnp.float32)
        + bo_ref[...]
    )  # [T*B, O]

    whh = whh_ref[...]

    # ---- Serial recurrence, fully unrolled (T is small & static).
    # Per step only one [B,H]x[H,H] dot + add is on the latency-bound chain.
    h = h0_ref[...]
    h_in = []  # hidden state ENTERING each step (what the original concat uses)
    for t in range(T):
        h_in.append(h)
        h = (
            jnp.dot(h, whh, preferred_element_type=jnp.float32)
            + zin_h[t * B:(t + 1) * B, :]          # static, sublane-aligned slice
        )
    hT_ref[...] = h                                 # only the final hidden is emitted

    # ---- Deferred, batched output path + log-softmax epilogue.
    hs = jnp.concatenate(h_in, axis=0)              # [T*B, H]
    raw = (
        jnp.dot(hs, who_ref[...], preferred_element_type=jnp.float32)
        + zin_o
    )                                               # [T*B, O] pre-softmax logits
    # TODO(synk): nn.Dropout(0.1) is identity in eval mode; training-mode RNG
    # masking of `raw` (before the log-softmax) is not reproduced here.
    m = jnp.max(raw, axis=1, keepdims=True)
    s = raw - m
    lse = jnp.log(jnp.sum(jnp.exp(s), axis=1, keepdims=True))
    out_ref[...] = s - lse                          # one lane-packed slab store


def rnn_sequence_forward(category, xs, hidden0, params):
    """Run T recurrent steps inside ONE pallas_call (no grid).

    category: [B, C]   (time-invariant, as in the char-generation use)
    xs:       [T, B, I]
    hidden0:  [B, H]
    Returns (log_probs [T, B, O], hidden_final [B, H]).
    """
    T, B, I = xs.shape
    C = category.shape[1]
    H = hidden0.shape[1]
    O = params["w_cx_o"].shape[1]

    # One-time glue in plain XLA: broadcast the time-invariant category,
    # concatenate with the inputs, and flatten time into the row dimension so
    # the kernel sees a single sublane/lane-friendly 2-D slab.
    cx = jnp.concatenate(
        [jnp.broadcast_to(category[None], (T, B, C)), xs], axis=2
    ).reshape(T * B, C + I)

    # Everything fits trivially in VMEM at these shapes (few tens of KiB), so
    # full-array VMEM residency is safe on v5e/v6e (128 MiB) and v7x (64 MiB).
    vmem = lambda: pl.BlockSpec(memory_space=pltpu.MemorySpace.VMEM)

    out2, hT = pl.pallas_call(
        functools.partial(rnn_seq_kernel, T=T, B=B),
        out_shape=(
            jax.ShapeDtypeStruct((T * B, O), jnp.float32),
            jax.ShapeDtypeStruct((B, H), jnp.float32),
        ),
        in_specs=[vmem() for _ in range(8)],
        out_specs=(vmem(), vmem()),
    )(
        cx, hidden0,
        params["w_cx_h"], params["w_cx_o"],
        params["w_h_h"], params["w_h_o"],
        params["b_h"], params["b_o"],
    )

    return out2.reshape(T, B, O), hT


def rnn_forward(category, inp, hidden, params):
    """Single-step forward matching the original module signature."""
    log_probs, hidden_new = rnn_sequence_forward(category, inp[None], hidden, params)
    return log_probs[0], hidden_new


def init_params(key, category_size, input_size, hidden_size, output_size):
    """nn.Linear-compatible params + folded/split kernel params."""
    C, I, H, O = category_size, input_size, hidden_size, output_size
    in_ih = C + I + H
    in_oo = O + H
    k = jax.random.split(key, 6)

    def lin(kw, kb, fan_in, fan_out):
        bound = 1.0 / jnp.sqrt(fan_in)
        # Stored already transposed relative to PyTorch ([in, out]).
        w = jax.random.uniform(kw, (fan_in, fan_out), jnp.float32, -bound, bound)
        b = jax.random.uniform(kb, (1, fan_out), jnp.float32, -bound, bound)
        return w, b

    w_i2h, b_i2h = lin(k[0], k[1], in_ih, H)
    w_i2o, b_i2o = lin(k[2], k[3], in_ih, O)
    w_o2o, b_o2o = lin(k[4], k[5], in_oo, O)

    # Split o2o by operand rows: first O rows act on the i2o output, remaining
    # H rows act on the new hidden (this is the cat(out, hidden') concat).
    w_o2o_out = w_o2o[:O, :]
    w_o2o_hid = w_o2o[O:, :]

    # Fold the entire (linear) output path into one projection of `combined`:
    #   out_pre = combined @ w_out_fold + b_out_fold
    w_out_fold = w_i2o @ w_o2o_out + w_i2h @ w_o2o_hid            # [in_ih, O]
    b_out_fold = b_i2o @ w_o2o_out + b_i2h @ w_o2o_hid + b_o2o    # [1, O]

    CI = C + I
    return {
        # original-form params (for the pure-JAX reference check)
        "w_i2h": w_i2h, "b_i2h": b_i2h,
        "w_i2o": w_i2o, "b_i2o": b_i2o,
        "w_o2o": w_o2o, "b_o2o": b_o2o,
        # split/folded params for the kernel
        "w_cx_h": w_i2h[:CI, :],        # [C+I, H]
        "w_h_h":  w_i2h[CI:, :],        # [H, H]
        "b_h":    b_i2h,                # [1, H]
        "w_cx_o": w_out_fold[:CI, :],   # [C+I, O]
        "w_h_o":  w_out_fold[CI:, :],   # [H, O]
        "b_o":    b_out_fold,           # [1, O]
    }


if __name__ == "__main__":
    # Small shapes consistent with the module's forward signature.
    B = 8          # batch
    CATEGORY = 8   # categorySize (categoryN)
    INPUT = 16     # inputSize
    HIDDEN = 32    # hiddenSize
    OUTPUT = 16    # outputSize
    T = 6          # number of recurrent steps run inside one kernel

    key = jax.random.PRNGKey(0)
    kc, kx, kp = jax.random.split(key, 3)

    category = jax.random.normal(kc, (B, CATEGORY), jnp.float32)
    xs = jax.random.normal(kx, (T, B, INPUT), jnp.float32)
    hidden0 = jnp.zeros((B, HIDDEN), jnp.float32)  # initHidden() per batch row

    params = init_params(kp, CATEGORY, INPUT, HIDDEN, OUTPUT)

    log_probs, hidden_final = rnn_sequence_forward(category, xs, hidden0, params)
    jax.block_until_ready((log_probs, hidden_final))

    # Pure-JAX reference of the ORIGINAL module math, step by step.
    def ref_step(h, x):
        combined = jnp.concatenate([category, x, h], axis=1)
        h_new = combined @ params["w_i2h"] + params["b_i2h"]
        out = combined @ params["w_i2o"] + params["b_i2o"]
        out = jnp.concatenate([out, h_new], axis=1) @ params["w_o2o"] + params["b_o2o"]
        out = jax.nn.log_softmax(out, axis=1)
        return h_new, out

    h_ref = hidden0
    ref_outs = []
    for t in range(T):
        h_ref, o_ref = ref_step(h_ref, xs[t])
        ref_outs.append(o_ref)
    ref_outs = jnp.stack(ref_outs)

    assert jnp.allclose(log_probs, ref_outs, atol=1e-4, rtol=1e-4), float(
        jnp.max(jnp.abs(log_probs - ref_outs))
    )
    assert jnp.allclose(hidden_final, h_ref, atol=1e-4, rtol=1e-4)

    # Single-step wrapper matches the original forward(category, input, hidden).
    out1, h1 = rnn_forward(category, xs[0], hidden0, params)
    h1_ref, o1_ref = ref_step(hidden0, xs[0])
    assert jnp.allclose(out1, o1_ref, atol=1e-4, rtol=1e-4)
    assert jnp.allclose(h1, h1_ref, atol=1e-4, rtol=1e-4)

    print("KERNEL_OK")
</pallas_src>

<mosaic_0001>
module attributes {stable_mosaic.version = 11 : i64} {
  func.func @rnn_seq_kernel(%arg0: memref<48x24xf32, #tpu.memory_space<vmem>>, %arg1: memref<8x32xf32, #tpu.memory_space<vmem>>, %arg2: memref<24x32xf32, #tpu.memory_space<vmem>>, %arg3: memref<24x16xf32, #tpu.memory_space<vmem>>, %arg4: memref<32x32xf32, #tpu.memory_space<vmem>>, %arg5: memref<32x16xf32, #tpu.memory_space<vmem>>, %arg6: memref<1x32xf32, #tpu.memory_space<vmem>>, %arg7: memref<1x16xf32, #tpu.memory_space<vmem>>, %arg8: memref<48x16xf32, #tpu.memory_space<vmem>>, %arg9: memref<8x32xf32, #tpu.memory_space<vmem>>) attributes {dimension_semantics = [], scalar_prefetch = 0 : i64, scratch_operands = 0 : i64, tpu.core_type = #tpu.core_type<tc>} {
    %c0 = arith.constant 0 : index
    %c0_0 = arith.constant 0 : index
    %0 = vector.load %arg0[%c0, %c0_0] : memref<48x24xf32, #tpu.memory_space<vmem>>, vector<48x24xf32>
    %c0_1 = arith.constant 0 : index
    %c0_2 = arith.constant 0 : index
    %1 = vector.load %arg2[%c0_1, %c0_2] : memref<24x32xf32, #tpu.memory_space<vmem>>, vector<24x32xf32>
    %cst = arith.constant dense<0.000000e+00> : vector<48x32xf32>
    %2 = tpu.matmul %0, %1, %cst {dimension_numbers = #tpu.dot_dimension_numbers<[1], [0], [0], [1], [0, 0, 1, 1], [], []>} : vector<48x24xf32>, vector<24x32xf32>, vector<48x32xf32> -> vector<48x32xf32>
    %c0_3 = arith.constant 0 : index
    %c0_4 = arith.constant 0 : index
    %3 = vector.load %arg6[%c0_3, %c0_4] : memref<1x32xf32, #tpu.memory_space<vmem>>, vector<1x32xf32>
    %4 = vector.broadcast %3 : vector<1x32xf32> to vector<48x32xf32>
    %5 = arith.addf %2, %4 : vector<48x32xf32>
    %c0_5 = arith.constant 0 : index
    %c0_6 = arith.constant 0 : index
    %6 = vector.load %arg3[%c0_5, %c0_6] : memref<24x16xf32, #tpu.memory_space<vmem>>, vector<24x16xf32>
    %cst_7 = arith.constant dense<0.000000e+00> : vector<48x16xf32>
    %7 = tpu.matmul %0, %6, %cst_7 {dimension_numbers = #tpu.dot_dimension_numbers<[1], [0], [0], [1], [0, 0, 1, 1], [], []>} : vector<48x24xf32>, vector<24x16xf32>, vector<48x16xf32> -> vector<48x16xf32>
    %c0_8 = arith.constant 0 : index
    %c0_9 = arith.constant 0 : index
    %8 = vector.load %arg7[%c0_8, %c0_9] : memref<1x16xf32, #tpu.memory_space<vmem>>, vector<1x16xf32>
    %9 = vector.broadcast %8 : vector<1x16xf32> to vector<48x16xf32>
    %10 = arith.addf %7, %9 : vector<48x16xf32>
    %c0_10 = arith.constant 0 : index
    %c0_11 = arith.constant 0 : index
    %11 = vector.load %arg4[%c0_10, %c0_11] : memref<32x32xf32, #tpu.memory_space<vmem>>, vector<32x32xf32>
    %c0_12 = arith.constant 0 : index
    %c0_13 = arith.constant 0 : index
    %12 = vector.load %arg1[%c0_12, %c0_13] : memref<8x32xf32, #tpu.memory_space<vmem>>, vector<8x32xf32>
    %cst_14 = arith.constant dense<0.000000e+00> : vector<8x32xf32>
    %13 = tpu.matmul %12, %11, %cst_14 {dimension_numbers = #tpu.dot_dimension_numbers<[1], [0], [0], [1], [0, 0, 1, 1], [], []>} : vector<8x32xf32>, vector<32x32xf32>, vector<8x32xf32> -> vector<8x32xf32>
    %14 = vector.extract_strided_slice %5 {offsets = [0, 0], sizes = [8, 32], strides = [1, 1]} : vector<48x32xf32> to vector<8x32xf32>
    %15 = arith.addf %13, %14 : vector<8x32xf32>
    %cst_15 = arith.constant dense<0.000000e+00> : vector<8x32xf32>
    %16 = tpu.matmul %15, %11, %cst_15 {dimension_numbers = #tpu.dot_dimension_numbers<[1], [0], [0], [1], [0, 0, 1, 1], [], []>} : vector<8x32xf32>, vector<32x32xf32>, vector<8x32xf32> -> vector<8x32xf32>
    %17 = vector.extract_strided_slice %5 {offsets = [8, 0], sizes = [8, 32], strides = [1, 1]} : vector<48x32xf32> to vector<8x32xf32>
    %18 = arith.addf %16, %17 : vector<8x32xf32>
    %cst_16 = arith.constant dense<0.000000e+00> : vector<8x32xf32>
    %19 = tpu.matmul %18, %11, %cst_16 {dimension_numbers = #tpu.dot_dimension_numbers<[1], [0], [0], [1], [0, 0, 1, 1], [], []>} : vector<8x32xf32>, vector<32x32xf32>, vector<8x32xf32> -> vector<8x32xf32>
    %20 = vector.extract_strided_slice %5 {offsets = [16, 0], sizes = [8, 32], strides = [1, 1]} : vector<48x32xf32> to vector<8x32xf32>
    %21 = arith.addf %19, %20 : vector<8x32xf32>
    %cst_17 = arith.constant dense<0.000000e+00> : vector<8x32xf32>
    %22 = tpu.matmul %21, %11, %cst_17 {dimension_numbers = #tpu.dot_dimension_numbers<[1], [0], [0], [1], [0, 0, 1, 1], [], []>} : vector<8x32xf32>, vector<32x32xf32>, vector<8x32xf32> -> vector<8x32xf32>
    %23 = vector.extract_strided_slice %5 {offsets = [24, 0], sizes = [8, 32], strides = [1, 1]} : vector<48x32xf32> to vector<8x32xf32>
    %24 = arith.addf %22, %23 : vector<8x32xf32>
    %cst_18 = arith.constant dense<0.000000e+00> : vector<8x32xf32>
    %25 = tpu.matmul %24, %11, %cst_18 {dimension_numbers = #tpu.dot_dimension_numbers<[1], [0], [0], [1], [0, 0, 1, 1], [], []>} : vector<8x32xf32>, vector<32x32xf32>, vector<8x32xf32> -> vector<8x32xf32>
    %26 = vector.extract_strided_slice %5 {offsets = [32, 0], sizes = [8, 32], strides = [1, 1]} : vector<48x32xf32> to vector<8x32xf32>
    %27 = arith.addf %25, %26 : vector<8x32xf32>
    %cst_19 = arith.constant dense<0.000000e+00> : vector<8x32xf32>
    %28 = tpu.matmul %27, %11, %cst_19 {dimension_numbers = #tpu.dot_dimension_numbers<[1], [0], [0], [1], [0, 0, 1, 1], [], []>} : vector<8x32xf32>, vector<32x32xf32>, vector<8x32xf32> -> vector<8x32xf32>
    %29 = vector.extract_strided_slice %5 {offsets = [40, 0], sizes = [8, 32], strides = [1, 1]} : vector<48x32xf32> to vector<8x32xf32>
    %30 = arith.addf %28, %29 : vector<8x32xf32>
    %c0_20 = arith.constant 0 : index
    %c0_21 = arith.constant 0 : index
    %31 = vector.load %arg9[%c0_20, %c0_21] : memref<8x32xf32, #tpu.memory_space<vmem>>, vector<8x32xf32>
    tpu.vector_store %arg9[%c0_20, %c0_21], %30 {strides = array<i32>} : memref<8x32xf32, #tpu.memory_space<vmem>>, vector<8x32xf32>,
    %32 = tpu.concatenate %12, %15, %18, %21, %24, %27 in 0 : vector<8x32xf32>, vector<8x32xf32>, vector<8x32xf32>, vector<8x32xf32>, vector<8x32xf32>, vector<8x32xf32> -> vector<48x32xf32>
    %c0_22 = arith.constant 0 : index
    %c0_23 = arith.constant 0 : index
    %33 = vector.load %arg5[%c0_22, %c0_23] : memref<32x16xf32, #tpu.memory_space<vmem>>, vector<32x16xf32>
    %cst_24 = arith.constant dense<0.000000e+00> : vector<48x16xf32>
    %34 = tpu.matmul %32, %33, %cst_24 {dimension_numbers = #tpu.dot_dimension_numbers<[1], [0], [0], [1], [0, 0, 1, 1], [], []>} : vector<48x32xf32>, vector<32x16xf32>, vector<48x16xf32> -> vector<48x16xf32>
    %35 = arith.addf %34, %10 : vector<48x16xf32>
    %cst_25 = arith.constant dense<0xFF800000> : vector<48xf32>
    %36 = vector.multi_reduction <maximumf>, %35, %cst_25 [1] : vector<48x16xf32> to vector<48xf32>
    %37 = vector.shape_cast %36 : vector<48xf32> to vector<48x1xf32>
    %38 = vector.broadcast %37 : vector<48x1xf32> to vector<48x16xf32>
    %39 = arith.subf %35, %38 : vector<48x16xf32>
    %40 = math.exp %39 : vector<48x16xf32>
    %cst_26 = arith.constant dense<0.000000e+00> : vector<48xf32>
    %41 = vector.multi_reduction <add>, %40, %cst_26 [1] : vector<48x16xf32> to vector<48xf32>
    %42 = vector.shape_cast %41 : vector<48xf32> to vector<48x1xf32>
    %43 = math.log %42 : vector<48x1xf32>
    %44 = vector.broadcast %43 : vector<48x1xf32> to vector<48x16xf32>
    %45 = arith.subf %39, %44 : vector<48x16xf32>
    %c0_27 = arith.constant 0 : index
    %c0_28 = arith.constant 0 : index
    %46 = vector.load %arg8[%c0_27, %c0_28] : memref<48x16xf32, #tpu.memory_space<vmem>>, vector<48x16xf32>
    tpu.vector_store %arg8[%c0_27, %c0_28], %45 {strides = array<i32>} : memref<48x16xf32, #tpu.memory_space<vmem>>, vector<48x16xf32>,
    return
  }
}

</mosaic_0001>

<bundles_post_ra>
// kernel: tpu_custom_call.1
= control target key start
LH: loop header
LB: loop body
LE: loop exit
PB: predicated region body
PF: predicated region fallthrough
CT: control target
= control target key end

     0   :  { %vm48_vm0 = vcmask 195584   ;;  %s1492_s0 = inlined_call_operand.vmem [shape: f32[48,24], index: 0, kind: input, shape index: {}]   ;;  %s1493_s1 = inlined_call_operand.vmem [shape: f32[8,32], index: 1, kind: input, shape index: {}]   ;;  %s1494_s2 = inlined_call_operand.vmem [shape: f32[24,32], index: 2, kind: input, shape index: {}]   ;;  %s1495_s3 = inlined_call_operand.vmem [shape: f32[24,16], index: 3, kind: input, shape index: {}]   ;;  %s1496_s4 = inlined_call_operand.vmem [shape: f32[32,32], index: 4, kind: input, shape index: {}]   ;;  %s1497_s5 = inlined_call_operand.vmem [shape: f32[32,16], index: 5, kind: input, shape index: {}]   ;;  %s1498_s6 = inlined_call_operand.vmem [shape: f32[1,32], index: 6, kind: input, shape index: {}]   ;;  %s1499_s7 = inlined_call_operand.vmem [shape: f32[1,16], index: 7, kind: input, shape index: {}]   ;;  %s1500_s8 = inlined_call_operand.vmem [shape: f32[48,16], index: 8, kind: output, shape index: {0}]   ;;  %s1501_s9 = inlined_call_operand.hbm [shape: f32[8,32], index: 9, kind: output, shape index: {1}]  }
   0x1   :  { %v38_v0 = vld [vmem:[%s1494_s2] sm:$0xff]  ;;  %v39_v1 = vld [vmem:[%s1494_s2 + $0x8] sm:$0xff]  ;;  %v40_v4 = vld [vmem:[%s1494_s2 + $0x10] sm:$0xff] }
   0x2   :  { %v1105_v2 = vpack.c.bf16 %v39_v1, %v38_v0  ;;  %v32_v3 = vld [vmem:[%s1492_s0] sm:$0xff]  ;;  %v268_v6 = vld [vmem:[%s1496_s4 + $0x8] sm:$0xff] }
   0x3   :  { %998 = vmatprep.mubr.msk.f32.mxu0 %vm48_vm0, %v32_v3  ;;  %1013 = vmatprep.mubr.msk.f32.mxu1 %vm48_vm0, %v32_v3  ;;  %v267_v5 = vld [vmem:[%s1496_s4] sm:$0xff] }
   0x4   :  { %1106 = vmatprep.subr.bf16.mxu0 %v1105_v2 }
   0x5   :  { %1108 = vmatpush3.bf16.msra.mxu0 %v1105_v2 }
   0x6   :  { %15 = vsyncpa [#allocation3], 0  ;;  %996 = vmatprep.subr.mxu0 %v40_v4  ;;  %v33_v7 = vld [vmem:[%s1492_s0 + $0x8] sm:$0xff]  ;;  %v1298_v8 = vpack.c.bf16 %v268_v6, %v267_v5  ;;  %v1303_v9 = vld [vmem:[%s1492_s0 + $0x10] sm:$0xff]  ;;  %v1221_v12 = vmov 0.0|0.0   ;;  %vm1222_vm1 = vmmov 0  }
   0x7   :  { %v269_v10 = vld [vmem:[%s1496_s4 + $0x10] sm:$0xff]  ;;  %v270_v11 = vld [vmem:[%s1496_s4 + $0x18] sm:$0xff]  ;;  %v36_v15 = vld [vmem:[%s1492_s0 + $0x20] sm:$0xff]  ;;  %v1223_v17 = vmov 0.0   ;;  %vm272_vm2 = vcmask 261120   ;;  %vm811_vm3 = vcmask 130048  }
   0x8   :  { %v35_v13 = vld [vmem:[%s1492_s0 + $0x18] sm:$0xff]  ;;  %v1319_v14 = vpack.c.bf16 %v270_v11, %v269_v10  ;;  %v37_v16 = vld [vmem:[%s1492_s0 + $0x28] sm:$0xff]  ;;  %v1338_v18 = vld [vmem:[%s1493_s1] sm:$0xff] }
   0x9   :  { %997 = vmatpush3.msra.mxu0 %v40_v4  ;;  %v908_v19 = vld [vmem:[%s1498_s6] ss:$0 sm:$0xff]  ;;  %v163_v36 = vld [vmem:[%s1495_s3 + $0x8] sm:$0xff]  ;;  %v164_v38 = vld [vmem:[%s1495_s3 + $0x10] sm:$0xff] }
   0xa   :  { %999 = vmatmul.mubr.msk.f32.vlgmr.msra.gmra.mrb[0].mxu0 %vm48_vm0, %v33_v7  ;;  %1113 = vmatprep.subr.bf16.mxu0 %v1221_v12  ;;  %v162_v35 = vld [vmem:[%s1495_s3] sm:$0xff]  ;;  %v713_v49 = vld [vmem:[%s1497_s5 + $0x8] sm:$0xff]  ;;  %v714_v51 = vld [vmem:[%s1497_s5 + $0x10] sm:$0xff] }
   0xb   :  { %1115 = vmatpush3.bf16.msra.mxu0 %v1298_v8  ;;  %1001 = vmatprep.mubr.msk.f32.mxu0 %vm48_vm0, %v1303_v9  ;;  %v1109_v37 = vpack.c.bf16 %v163_v36, %v162_v35  ;;  %v712_v48 = vld [vmem:[%s1497_s5] sm:$0xff]  ;;  %v715_v52 = vld [vmem:[%s1497_s5 + $0x18] sm:$0xff] }
   0xc   :  { %1116 = vmatprep.subr.bf16.mxu0 %v1221_v12  ;;  %v1149_v50 = vpack.c.bf16 %v713_v49, %v712_v48  ;;  %v1153_v56 = vpack.c.bf16 %v715_v52, %v714_v51  ;;  %v915_v60 = vld [vmem:[%s1499_s7] ss:$0 sm:$0xff]  ;;  %s1224_s7 = smov [#allocation2]  }
   0xd   :  { %1110 = vmatprep.subr.bf16.mxu1 %v1109_v37  ;;  %s898_s26 = sshll.u32 %s1224_s7, 4  ;;  %s899_s26 = int_to_ptr.vmem [resolvable:$true] %s898_s26 }
   0xe   :  { %1002 = vmatmul.mubr.msk.f32.gmra.mrb[2].mxu0 %vm48_vm0, %v35_v13  ;;  %1112 = vmatpush3.bf16.msra.mxu1 %v1109_v37  ;;  %s1197_s27 = scalar_lea.vmem %s899_s26, 128  ;;  %p1202_p1 = scmp.lt.s32.totalorder %s899_s26, %s899_s26 }
   0xf   :  { %1004 = vmatprep.mubr.msk.f32.mxu0 %vm48_vm0, %v36_v15  ;;  %1118 = vmatpush3.bf16.msra.mxu0 %v1319_v14  ;;  %p1198_p0 = scmp.ne.s32.totalorder %s899_s26, %s1197_s27  ;;  %p1203_p2 = scmp.lt.s32.totalorder %s1197_s27, %s1197_s27 }
  0x10   :  { %1119 = vmatprep.subr.bf16.mxu0 %v1221_v12  ;;  %1011 = vmatprep.subr.mxu1 %v164_v38 }
  0x11   :  { %p1204_p3 = por %p1203_p2, %p1202_p1 }
  0x12   :  { %1005 = vmatmul.mubr.msk.f32.gmra.mrb[4].mxu0 %vm48_vm0, %v37_v16  ;;  %1012 = vmatpush3.msra.mxu1 %v164_v38 }
  0x13   :  { %1030 = vmatprep.mubr.msk.f32.mxu0 %vm1222_vm1, %v1223_v17  ;;  %1014 = vmatmul.mubr.msk.f32.vlgmr.msra.gmra.mrb[0].mxu1 %vm48_vm0, %v33_v7  ;;  %p1205_p4 = pnand %p1204_p3, %p1198_p0 }
  0x14   :  { %1131 = vmatprep.subr.bf16.mxu1 %v1221_v12  ;;  %1016 = vmatprep.mubr.msk.f32.mxu1 %vm48_vm0, %v1303_v9 }
  0x15   :  { %1133 = vmatpush3.bf16.msra.mxu1 %v1298_v8 }
  0x16   :  { %1031 = vmatmul.mubr.msk.f32.vlgmr.msra.gmra.mrb[6].mxu0 %vm272_vm2, %v1338_v18  ;;  %1134 = vmatprep.subr.bf16.mxu1 %v1221_v12 }
  0x17   :  { %1121 = vmatpush3.bf16.msra.mxu0 %v1298_v8  ;;  %1041 = vmatprep.mubr.msk.f32.mxu0 %vm1222_vm1, %v1223_v17 }
  0x18   :  { %1122 = vmatprep.subr.bf16.mxu0 %v1221_v12  ;;  %1017 = vmatmul.mubr.msk.f32.gmra.mrb[2].mxu1 %vm48_vm0, %v35_v13 }
  0x19   :  { %1019 = vmatprep.mubr.msk.f32.mxu1 %vm48_vm0, %v36_v15  ;;  %1136 = vmatpush3.bf16.msra.mxu1 %v1319_v14 }
  0x1a   :  { %1143 = vmatprep.subr.bf16.mxu1 %v1221_v12 }
  0x1b   :  { %1124 = vmatpush3.bf16.msra.mxu0 %v1319_v14 }
  0x1c   :  { %1125 = vmatprep.subr.bf16.mxu0 %v1221_v12  ;;  %1020 = vmatmul.mubr.msk.f32.gmra.mrb[4].mxu1 %vm48_vm0, %v37_v16 }
  0x1d   :  { %1063 = vmatprep.mubr.msk.f32.mxu1 %vm1222_vm1, %v1223_v17 }
  0xdd   :  { %v1000_v20 = vpop.f32.mrb[0].mxu0 }
  0xde   :  { %v139_v21 = vadd.f32 %v1000_v20, %v908_v19  ;;  %v133_v22 = vpop.f32.mrb[1].mxu0 }
  0xdf   :  { %v134_v31 = vadd.f32 %v908_v19, %v133_v22 }
  0xe1   :  { %v1003_v23 = vpop.f32.mrb[2].mxu0 }
  0xe2   :  { %v149_v24 = vadd.f32 %v1003_v23, %v908_v19  ;;  %v143_v25 = vpop.f32.mrb[3].mxu0 }
  0xe3   :  { %v144_v26 = vadd.f32 %v908_v19, %v143_v25 }
  0xe5   :  { %v1006_v27 = vpop.f32.mrb[4].mxu0 }
  0xe6   :  { %v1351_v28 = vadd.f32 %v1006_v27, %v908_v19  ;;  %v153_v29 = vpop.f32.mrb[5].mxu0 }
  0xe7   :  { %v154_v30 = vadd.f32 %v908_v19, %v153_v29 }
  0xe9   :  { %v342_v32 = vpop.f32.mrb[6].mxu0 }
  0xea   :  { %v343_v33 = vadd.f32 %v342_v32, %v134_v31  ;;  %v1032_v34 = vpop.f32.mrb[7].mxu0 }
  0xec   :  { %1042 = vmatmul.mubr.msk.f32.vlgmr.msra.gmra.mrb[8].mxu0 %vm272_vm2, %v343_v33 }
  0xed   :  { %1127 = vmatpush3.bf16.msra.mxu0 %v1298_v8  ;;  %1052 = vmatprep.mubr.msk.f32.mxu0 %vm1222_vm1, %v1223_v17 }
  0xee   :  { %1128 = vmatprep.subr.bf16.mxu0 %v1221_v12 }
  0xf1   :  { %1130 = vmatpush3.bf16.msra.mxu0 %v1319_v14 }
  0xf2   :  { %1137 = vmatprep.subr.bf16.mxu0 %v1221_v12 }
 0x1bf   :  { %v415_v39 = vpop.f32.mrb[8].mxu0 }
 0x1c0   :  { %v416_v40 = vadd.f32 %v415_v39, %v139_v21  ;;  %v1043_v41 = vpop.f32.mrb[9].mxu0 }
 0x1c2   :  { %1053 = vmatmul.mubr.msk.f32.vlgmr.msra.gmra.mrb[10].mxu0 %vm272_vm2, %v416_v40 }
 0x1c3   :  { %1139 = vmatpush3.bf16.msra.mxu0 %v1298_v8  ;;  %1074 = vmatprep.mubr.msk.f32.mxu0 %vm1222_vm1, %v1223_v17 }
 0x1c4   :  { %1140 = vmatprep.subr.bf16.mxu0 %v1221_v12 }
 0x1c7   :  { %1142 = vmatpush3.bf16.msra.mxu0 %v1319_v14 }
 0x295   :  { %v488_v42 = vpop.f32.mrb[10].mxu0 }
 0x296   :  { %v489_v43 = vadd.f32 %v488_v42, %v144_v26  ;;  %v1054_v44 = vpop.f32.mrb[11].mxu0 }
 0x298   :  { %1064 = vmatmul.mubr.msk.f32.vlgmr.msra.gmra.mrb[6].mxu1 %vm272_vm2, %v489_v43 }
 0x299   :  { %1145 = vmatpush3.bf16.msra.mxu1 %v1298_v8  ;;  %1085 = vmatprep.mubr.msk.f32.mxu1 %vm1222_vm1, %v1223_v17 }
 0x29a   :  { %1146 = vmatprep.subr.bf16.mxu1 %v1221_v12 }
 0x29d   :  { %1148 = vmatpush3.bf16.msra.mxu1 %v1319_v14 }
 0x29e   :  { %1150 = vmatprep.subr.bf16.mxu1 %v1149_v50 }
 0x36b   :  { %v561_v45 = vpop.f32.mrb[6].mxu1 }
 0x36c   :  { %v562_v46 = vadd.f32 %v561_v45, %v149_v24  ;;  %v1065_v47 = vpop.f32.mrb[7].mxu1 }
 0x36e   :  { %1075 = vmatmul.mubr.msk.f32.vlgmr.msra.gmra.mrb[12].mxu0 %vm272_vm2, %v562_v46 }
 0x441   :  { %v634_v53 = vpop.f32.mrb[12].mxu0 }
 0x442   :  { %v635_v54 = vadd.f32 %v634_v53, %v154_v30  ;;  %v1076_v55 = vpop.f32.mrb[13].mxu0 }
 0x444   :  { %1086 = vmatmul.mubr.msk.f32.vlgmr.msra.gmra.mrb[8].mxu1 %vm272_vm2, %v635_v54 }
 0x445   :  { %1152 = vmatpush3.bf16.msra.mxu1 %v1149_v50  ;;  %1096 = vmatprep.mubr.msk.f32.mxu1 %vm272_vm2, %v1338_v18 }
 0x446   :  { %1154 = vmatprep.subr.bf16.mxu1 %v1153_v56 }
 0x449   :  { %1156 = vmatpush3.bf16.msra.mxu1 %v1153_v56 }
 0x44c   :  { %1097 = vmatmul.mubr.msk.f32.vlgmr.msra.gmra.mrb[0].mxu1 %vm272_vm2, %v343_v33 }
 0x44d   :  { %1099 = vmatprep.mubr.msk.f32.mxu1 %vm272_vm2, %v416_v40 }
 0x450   :  { %1100 = vmatmul.mubr.msk.f32.gmra.mrb[2].mxu1 %vm272_vm2, %v489_v43 }
 0x451   :  { %1102 = vmatprep.mubr.msk.f32.mxu1 %vm272_vm2, %v562_v46 }
 0x454   :  { %1103 = vmatmul.mubr.msk.f32.gmra.mrb[4].mxu1 %vm272_vm2, %v635_v54 }
 0x517   :  { %v707_v57 = vpop.f32.mrb[8].mxu1 }
 0x518   :  { %v708_v58 = vadd.f32 %v707_v57, %v1351_v28  ;;  %v1087_v59 = vpop.f32.mrb[9].mxu1 }
 0x51a   :  { %711 = vst.msk [vmem:[#allocation2] sm:$0xff] %vm272_vm2, %v708_v58 }
 0x51f   :  { %v1098_v61 = vpop.f32.mrb[0].mxu1 }
 0x520   :  { %v1157_v62 = vadd.f32 %v1098_v61, %v915_v60  ;;  %v782_v63 = vpop.f32.mrb[1].mxu1 }
 0x521   :  { %v1158_v0 = vadd.f32 %v915_v60, %v782_v63 }
 0x522   :  { %v815_v1 = vsel %vm811_vm3, %v1157_v62, -inf }
 0x523   :  { %816 = vmax.xlane.f32.xlu0 %v815_v1  ;;  %v1101_v2 = vpop.f32.mrb[2].mxu1  ;;  %v812_v7 = vsel %vm811_vm3, %v1158_v0, -inf }
 0x524   :  { %v1159_v3 = vadd.f32 %v1101_v2, %v915_v60  ;;  %v792_v4 = vpop.f32.mrb[3].mxu1 }
 0x525   :  { %v1160_v5 = vadd.f32 %v915_v60, %v792_v4 }
 0x526   :  { %v821_v6 = vsel %vm811_vm3, %v1159_v3, -inf }
 0x527   :  { %822 = vmax.xlane.f32.xlu1 %v821_v6  ;;  %v1104_v8 = vpop.f32.mrb[4].mxu1  ;;  %813 = vmax.xlane.f32.xlu0 %v812_v7  ;;  %v818_v12 = vsel %vm811_vm3, %v1160_v5, -inf }
 0x528   :  { %v802_v9 = vpop.f32.mrb[5].mxu1  ;;  %v1161_v11 = vadd.f32 %v1104_v8, %v915_v60 }
 0x529   :  { %v1162_v10 = vadd.f32 %v915_v60, %v802_v9 }
 0x52a   :  { %v827_v14 = vsel %vm811_vm3, %v1161_v11, -inf }
 0x52b   :  { %819 = vmax.xlane.f32.xlu1 %v818_v12  ;;  %v824_v13 = vsel %vm811_vm3, %v1162_v10, -inf }
 0x52c   :  { %825 = vmax.xlane.f32.xlu0 %v824_v13 }
 0x52f   :  { %828 = vmax.xlane.f32.xlu1 %v827_v14 }
 0x5b0   :  { %v817_v15 = vpop.xlane.xlu0 %816 }
 0x5b1   :  { %v1426_v16 = vsub.f32 %v1157_v62, %v817_v15 }
 0x5b3   :  { %v838_v17 = vmul.f32 1.442695, %v1426_v16 }
 0x5b4   :  { %v823_v18 = vpop.xlane.xlu1 %822  ;;  %v814_v19 = vpop.xlane.xlu0 %813 }
 0x5b5   :  { %1173 = vpow2.f32 %v838_v17  ;;  %v1429_v20 = vsub.f32 %v1159_v3, %v823_v18  ;;  %v1431_v21 = vsub.f32 %v1158_v0, %v814_v19 }
 0x5b7   :  { %v842_v22 = vmul.f32 1.442695, %v1429_v20  ;;  %v836_v23 = vmul.f32 1.442695, %v1431_v21 }
 0x5b8   :  { %v820_v24 = vpop.xlane.xlu1 %819 }
 0x5b9   :  { %1175 = vpow2.f32 %v842_v22  ;;  %v1435_v25 = vsub.f32 %v1160_v5, %v820_v24  ;;  %v826_v26 = vpop.xlane.xlu0 %825 }
 0x5ba   :  { %1177 = vpow2.f32 %v836_v23  ;;  %v1437_v27 = vsub.f32 %v1162_v10, %v826_v26 }
 0x5bb   :  { %v840_v28 = vmul.f32 1.442695, %v1435_v25 }
 0x5bc   :  { %v844_v29 = vmul.f32 1.442695, %v1437_v27  ;;  %v829_v30 = vpop.xlane.xlu1 %828 }
 0x5bd   :  { %1179 = vpow2.f32 %v840_v28  ;;  %v1441_v31 = vsub.f32 %v1161_v11, %v829_v30 }
 0x5be   :  { %1181 = vpow2.f32 %v844_v29 }
 0x5bf   :  { %v1174_v32 = vpop.eup %1173  ;;  %v846_v33 = vmul.f32 1.442695, %v1441_v31 }
 0x5c0   :  { %v851_v34 = vsel %vm811_vm3, %v1174_v32, 0.0 }
 0x5c1   :  { %1183 = vpow2.f32 %v846_v33  ;;  %852 = vadd.xlane.f32.xlu1 %v851_v34 }
 0x5c3   :  { %v1176_v35 = vpop.eup %1175 }
 0x5c4   :  { %v1178_v36 = vpop.eup %1177  ;;  %v857_v37 = vsel %vm811_vm3, %v1176_v35, 0.0 }
 0x5c5   :  { %858 = vadd.xlane.f32.xlu1 %v857_v37  ;;  %v848_v38 = vsel %vm811_vm3, %v1178_v36, 0.0 }
 0x5c6   :  { %849 = vadd.xlane.f32.xlu0 %v848_v38 }
 0x5c7   :  { %v1180_v39 = vpop.eup %1179 }
 0x5c8   :  { %v854_v40 = vsel %vm811_vm3, %v1180_v39, 0.0  ;;  %v1182_v41 = vpop.eup %1181 }
 0x5c9   :  { %v860_v44 = vsel %vm811_vm3, %v1182_v41, 0.0 }
 0x5ca   :  { %855 = vadd.xlane.f32.xlu0 %v854_v40 }
 0x5cb   :  { %v1184_v42 = vpop.eup %1183 }
 0x5cc   :  { %v863_v43 = vsel %vm811_vm3, %v1184_v42, 0.0 }
 0x5cd   :  { %864 = vadd.xlane.f32.xlu1 %v863_v43 }
 0x5ce   :  { %861 = vadd.xlane.f32.xlu0 %v860_v44 }
 0x5cf   :  { %1208 = shalt.err (!%p1205_p4)
}
 0x5d0   :  { %s1209_s4 = scalar_lea.hbm %s1501_s9, 128 }
 0x5d1   :  { %p1210_p5 = scmp.ne.s32.totalorder %s1501_s9, %s1209_s4  ;;  %p1213_p6 = scmp.lt.u32.totalorder %s1209_s4, %s1501_s9 }
 0x5d3   :  { %p1215_p7 = pnand %p1213_p6, %p1210_p5 }
 0x5d5   :  { %1218 = shalt.err (!%p1215_p7)
}
 0x5d6   :  { %901 = dma.vmem_to_hbm [thread:$0]  %s899_s26, 128, %s1501_s9, [#allocation3]  }
 0x64e   :  { %v853_v45 = vpop.xlane.xlu1 %852 }
 0x64f   :  { %1185 = vlog2.f32 %v853_v45 }
 0x652   :  { %v859_v46 = vpop.xlane.xlu1 %858 }
 0x653   :  { %1187 = vlog2.f32 %v859_v46  ;;  %v850_v47 = vpop.xlane.xlu0 %849 }
 0x654   :  { %1189 = vlog2.f32 %v850_v47 }
 0x657   :  { %v856_v48 = vpop.xlane.xlu0 %855 }
 0x658   :  { %1191 = vlog2.f32 %v856_v48 }
 0x659   :  { %v1186_v49 = vpop.eup %1185 }
 0x65a   :  { %v869_v50 = vmul.f32 0.6931472, %v1186_v49  ;;  %v865_v51 = vpop.xlane.xlu1 %864 }
 0x65b   :  { %1193 = vlog2.f32 %v865_v51  ;;  %v862_v52 = vpop.xlane.xlu0 %861 }
 0x65c   :  { %v879_v53 = vsub.f32 %v1426_v16, %v869_v50  ;;  %1195 = vlog2.f32 %v862_v52 }
 0x65d   :  { %v1188_v54 = vpop.eup %1187 }
 0x65e   :  { %v1190_v55 = vpop.eup %1189  ;;  %885 = vst.msk [vmem:[%s1500_s8 + $0x8] sm:$0xff] %vm811_vm3, %v879_v53  ;;  %v873_v56 = vmul.f32 0.6931472, %v1188_v54 }
 0x65f   :  { %v867_v57 = vmul.f32 0.6931472, %v1190_v55 }
 0x660   :  { %v881_v58 = vsub.f32 %v1429_v20, %v873_v56 }
 0x661   :  { %v878_v59 = vsub.f32 %v1431_v21, %v867_v57 }
 0x662   :  { %v1192_v60 = vpop.eup %1191  ;;  %887 = vst.msk [vmem:[%s1500_s8 + $0x18] sm:$0xff] %vm811_vm3, %v881_v58 }
 0x663   :  { %884 = vst.msk [vmem:[%s1500_s8] sm:$0xff] %vm811_vm3, %v878_v59  ;;  %v871_v61 = vmul.f32 0.6931472, %v1192_v60 }
 0x665   :  { %v1194_v62 = vpop.eup %1193  ;;  %v880_v63 = vsub.f32 %v1435_v25, %v871_v61 }
 0x666   :  { %v1196_v0 = vpop.eup %1195  ;;  %v877_v1 = vmul.f32 0.6931472, %v1194_v62 }
 0x667   :  { %886 = vst.msk [vmem:[%s1500_s8 + $0x10] sm:$0xff] %vm811_vm3, %v880_v63  ;;  %v875_v2 = vmul.f32 0.6931472, %v1196_v0 }
 0x668   :  { %v883_v3 = vsub.f32 %v1441_v31, %v877_v1 }
 0x669   :  { %v882_v4 = vsub.f32 %v1437_v27, %v875_v2 }
 0x66a   :  { %889 = vst.msk [vmem:[%s1500_s8 + $0x28] sm:$0xff] %vm811_vm3, %v883_v3 }
 0x66b   :  { %888 = vst.msk [vmem:[%s1500_s8 + $0x20] sm:$0xff] %vm811_vm3, %v882_v4 }
 0x66c   :  { %1219 = dma.done.wait [#allocation3], 128  }
 0x66d   :  { %1220 = vsyncadd [#allocation3], 4294967168 }
 0x66e   :  { %907 = vsyncpa [#allocation3], 1 }

</bundles_post_ra>
